<compile_context>
chip_gen: v5e
topology: v5e:2x2
jax: 0.10.0
libtpu: 0.0.40
codegen_flags: <defaults>
</compile_context>

<pallas_src>
import jax
import jax.numpy as jnp
from jax.experimental import pallas as pl
from jax.experimental.pallas import tpu as pltpu


def _soft_target_ce_kernel(x_ref, t_ref, loss_ref):
    """Per-row soft-target cross-entropy for one (tile_rows, C) block."""
    x = x_ref[...].astype(jnp.float32)          # (TN, C)
    t = t_ref[...].astype(jnp.float32)          # (TN, C)

    # Numerically-stable log-sum-exp along the class (lane) axis.
    m = jnp.max(x, axis=-1, keepdims=True)      # (TN, 1)   XLU
    z = x - m                                   #            VALU
    lse = jnp.log(jnp.sum(jnp.exp(z), axis=-1, keepdims=True))  # EUP + XLU

    # sum_c(-(z_c - lse) * t_c) == lse * sum_c(t_c) - sum_c(z_c * t_c)
    # Keeping the explicit sum(t) term is exact even for unnormalized targets;
    # zero-padded rows contribute exactly zero loss.
    sum_t = jnp.sum(t, axis=-1, keepdims=True)
    s_zt = jnp.sum(z * t, axis=-1, keepdims=True)
    loss_ref[...] = lse * sum_t - s_zt          # (TN, 1) per-row losses


# Double-buffered input blocks (2 arrays x 2 pipeline buffers) must fit here.
_VMEM_INPUT_BUDGET_BYTES = 32 * 1024 * 1024


def _sublane_align(dtype):
    # Block rows must be a multiple of the sublane packing: 8 (32-bit),
    # 16 (16-bit), 32 (8-bit).
    return 8 * max(1, 4 // jnp.dtype(dtype).itemsize)


def soft_target_cross_entropy_loss(x, target, reduction="mean", tile_rows=2048):
    """x, target: (N, C) arrays. Returns scalar ('mean'/'sum') or (N,) ('none')."""
    assert x.shape == target.shape and x.ndim == 2
    n, c = x.shape
    assert c > 1, "This function is not for one-class prediction."
    assert reduction in ("mean", "sum", "none"), "Invalid reduction: " + reduction

    row_align = max(_sublane_align(x.dtype), _sublane_align(target.dtype))
    bytes_per_row = c * (jnp.dtype(x.dtype).itemsize + jnp.dtype(target.dtype).itemsize)

    # Largest row tile that (a) keeps the double-buffered inputs under the VMEM
    # budget and (b) does not exceed the (sublane-aligned) problem size.
    budget_rows = max(
        row_align,
        (_VMEM_INPUT_BUDGET_BYTES // (2 * bytes_per_row)) // row_align * row_align,
    )
    # TODO(synk): also tile over the class axis (online LSE) for extremely wide
    # C where even `row_align` rows overflow the VMEM budget.
    rows_needed = pl.cdiv(n, row_align) * row_align
    tile_rows = max(row_align, min(tile_rows, budget_rows, rows_needed))
    tile_rows = (tile_rows // row_align) * row_align

    n_pad = pl.cdiv(n, tile_rows) * tile_rows
    if n_pad != n:
        # Zero-padded targets contribute exactly zero loss; padded rows are
        # sliced off before the reduction anyway.
        x = jnp.pad(x, ((0, n_pad - n), (0, 0)))
        target = jnp.pad(target, ((0, n_pad - n), (0, 0)))

    num_blocks = n_pad // tile_rows
    block_in_bytes = tile_rows * bytes_per_row            # both input blocks
    vmem_limit = int(min(
        64 * 1024 * 1024,
        max(16 * 1024 * 1024, 2 * block_in_bytes + 2 * tile_rows * 4 + (4 << 20)),
    ))

    cost = pl.CostEstimate(
        flops=6 * n_pad * c,
        transcendentals=n_pad * c + n_pad,
        bytes_accessed=n_pad * bytes_per_row + n_pad * 4,
    )

    per_row = pl.pallas_call(
        _soft_target_ce_kernel,
        out_shape=jax.ShapeDtypeStruct((n_pad, 1), jnp.float32),
        grid_spec=pltpu.PrefetchScalarGridSpec(
            num_scalar_prefetch=0,
            grid=(num_blocks,),
            in_specs=[
                pl.BlockSpec((tile_rows, c), lambda i: (i, 0)),
                pl.BlockSpec((tile_rows, c), lambda i: (i, 0)),
            ],
            out_specs=pl.BlockSpec((tile_rows, 1), lambda i: (i, 0)),
        ),
        compiler_params=pltpu.CompilerParams(
            # No cross-step state -> grid shards across TensorCores (v7x).
            dimension_semantics=("parallel",),
            vmem_limit_bytes=vmem_limit,
        ),
        cost_estimate=cost,
    )(x, target)

    per_row = per_row[:n, 0]
    if reduction == "mean":
        return jnp.mean(per_row)
    if reduction == "sum":
        return jnp.sum(per_row)
    return per_row


if __name__ == "__main__":
    key = jax.random.PRNGKey(0)
    kx, kt = jax.random.split(key)

    # N = batch * max_len = 2 * 8 = 16 rows, C = 128 classes
    N, C = 16, 128
    x = jax.random.normal(kx, (N, C), dtype=jnp.float32)
    target = jax.nn.softmax(jax.random.normal(kt, (N, C), dtype=jnp.float32), axis=-1)

    ref_rows = jnp.sum(-jax.nn.log_softmax(x, axis=-1) * target, axis=-1)

    # reduction='mean' (module default)
    loss = jax.block_until_ready(soft_target_cross_entropy_loss(x, target, reduction="mean"))
    assert jnp.allclose(loss, jnp.mean(ref_rows), rtol=1e-5, atol=1e-5), (loss, jnp.mean(ref_rows))

    # reduction='sum'
    loss_sum = jax.block_until_ready(soft_target_cross_entropy_loss(x, target, reduction="sum"))
    assert jnp.allclose(loss_sum, jnp.sum(ref_rows), rtol=1e-5, atol=1e-5), (loss_sum, jnp.sum(ref_rows))

    # reduction='none'
    loss_none = jax.block_until_ready(soft_target_cross_entropy_loss(x, target, reduction="none"))
    assert jnp.allclose(loss_none, ref_rows, rtol=1e-5, atol=1e-5)

    # Non-tile-multiple row count (exercises the padding path).
    xo = x[:13]
    to = target[:13]
    loss_odd = jax.block_until_ready(soft_target_cross_entropy_loss(xo, to, reduction="mean"))
    assert jnp.allclose(loss_odd, jnp.mean(ref_rows[:13]), rtol=1e-5, atol=1e-5)

    # bf16 inputs (halves HBM bytes on this bandwidth-bound kernel)
    xb = x.astype(jnp.bfloat16)
    tb = target.astype(jnp.bfloat16)
    loss_bf16 = jax.block_until_ready(soft_target_cross_entropy_loss(xb, tb))
    ref_bf16 = jnp.mean(jnp.sum(
        -jax.nn.log_softmax(xb.astype(jnp.float32), axis=-1) * tb.astype(jnp.float32), axis=-1))
    assert jnp.allclose(loss_bf16, ref_bf16, rtol=2e-3, atol=2e-3), (loss_bf16, ref_bf16)

    print("KERNEL_OK")
</pallas_src>

<mosaic_0001>
module attributes {stable_mosaic.version = 11 : i64} {
  func.func @_soft_target_ce_kernel(%arg0: i32, %arg1: memref<16x128xf32, #tpu.memory_space<vmem>>, %arg2: memref<16x128xf32, #tpu.memory_space<vmem>>, %arg3: memref<16x1xf32, #tpu.memory_space<vmem>>) attributes {dimension_semantics = [#tpu.dimension_semantics<parallel>], iteration_bounds = array<i64: 1>, scalar_prefetch = 0 : i64, scratch_operands = 0 : i64, tpu.core_type = #tpu.core_type<tc>, window_params = [{transform_indices = @transform_0, window_bounds = array<i64: 16, 128>}, {transform_indices = @transform_1, window_bounds = array<i64: 16, 128>}, {transform_indices = @transform_2, window_bounds = array<i64: 16, 1>}]} {
    %c0 = arith.constant 0 : index
    %c0_0 = arith.constant 0 : index
    %0 = vector.load %arg1[%c0, %c0_0] : memref<16x128xf32, #tpu.memory_space<vmem>>, vector<16x128xf32>
    %c0_1 = arith.constant 0 : index
    %c0_2 = arith.constant 0 : index
    %1 = vector.load %arg2[%c0_1, %c0_2] : memref<16x128xf32, #tpu.memory_space<vmem>>, vector<16x128xf32>
    %cst = arith.constant dense<0xFF800000> : vector<16xf32>
    %2 = vector.multi_reduction <maximumf>, %0, %cst [1] : vector<16x128xf32> to vector<16xf32>
    %3 = vector.shape_cast %2 : vector<16xf32> to vector<16x1xf32>
    %4 = vector.broadcast %3 : vector<16x1xf32> to vector<16x128xf32>
    %5 = arith.subf %0, %4 : vector<16x128xf32>
    %6 = math.exp %5 : vector<16x128xf32>
    %cst_3 = arith.constant dense<0.000000e+00> : vector<16xf32>
    %7 = vector.multi_reduction <add>, %6, %cst_3 [1] : vector<16x128xf32> to vector<16xf32>
    %8 = vector.shape_cast %7 : vector<16xf32> to vector<16x1xf32>
    %9 = math.log %8 : vector<16x1xf32>
    %cst_4 = arith.constant dense<0.000000e+00> : vector<16xf32>
    %10 = vector.multi_reduction <add>, %1, %cst_4 [1] : vector<16x128xf32> to vector<16xf32>
    %11 = vector.shape_cast %10 : vector<16xf32> to vector<16x1xf32>
    %12 = arith.mulf %5, %1 : vector<16x128xf32>
    %cst_5 = arith.constant dense<0.000000e+00> : vector<16xf32>
    %13 = vector.multi_reduction <add>, %12, %cst_5 [1] : vector<16x128xf32> to vector<16xf32>
    %14 = vector.shape_cast %13 : vector<16xf32> to vector<16x1xf32>
    %15 = arith.mulf %9, %11 : vector<16x1xf32>
    %16 = arith.subf %15, %14 : vector<16x1xf32>
    %c0_6 = arith.constant 0 : index
    %c0_7 = arith.constant 0 : index
    %17 = vector.load %arg3[%c0_6, %c0_7] : memref<16x1xf32, #tpu.memory_space<vmem>>, vector<16x1xf32>
    tpu.vector_store %arg3[%c0_6, %c0_7], %16 {strides = array<i32>} : memref<16x1xf32, #tpu.memory_space<vmem>>, vector<16x1xf32>,
    return
  }
  func.func @transform_0(%arg0: i32) -> (i32, i32) {
    %c0_i32 = arith.constant 0 : i32
    %c0_i32_0 = arith.constant 0 : i32
    return %arg0, %c0_i32 : i32, i32
  }
  func.func @transform_1(%arg0: i32) -> (i32, i32) {
    %c0_i32 = arith.constant 0 : i32
    %c0_i32_0 = arith.constant 0 : i32
    return %arg0, %c0_i32 : i32, i32
  }
  func.func @transform_2(%arg0: i32) -> (i32, i32) {
    %c0_i32 = arith.constant 0 : i32
    %c0_i32_0 = arith.constant 0 : i32
    return %arg0, %c0_i32 : i32, i32
  }
}

</mosaic_0001>

<bundles_post_ra>
// kernel: tpu_custom_call.1
= control target key start
LH: loop header
LB: loop body
LE: loop exit
PB: predicated region body
PF: predicated region fallthrough
CT: control target
= control target key end

     0   :  { %7 = vsyncpa [#allocation3], 0  ;;  %s183_s0 = inlined_call_operand.hbm [shape: f32[16,128], index: 0, kind: input, shape index: {}]   ;;  %s184_s1 = inlined_call_operand.hbm [shape: f32[16,128], index: 1, kind: input, shape index: {}]   ;;  %s185_s2 = inlined_call_operand.vmem [shape: f32[16,1], index: 2, kind: output, shape index: {}]  }
   0x1   :  { %s13_s11 = sshll.u32 %s183_s0, 4  ;;  %s14_s11 = int_to_ptr.hbm [resolvable:$true] %s13_s11 }
   0x2   :  { %8 = vsyncpa [#allocation5], 0  ;;  %s152_s12 = smov [#allocation2]   ;;  %s26_s16 = sshll.u32 %s184_s1, 4  ;;  %s27_s16 = int_to_ptr.hbm [resolvable:$true] %s26_s16 }
   0x3   :  { %s15_s13 = sshll.u32 %s152_s12, 4  ;;  %s153_s17 = smov 128   ;;  %s16_s13 = int_to_ptr.vmem [resolvable:$true] %s15_s13 }
   0x4   :  { %s154_s18 = smov 8   ;;  %s155_s19 = smov [#allocation4]  }
   0x5   :  { %21 = dma.hbm_to_vmem [thread:$0]  %s14_s11, 256, %s16_s13, [#allocation3], %s153_s17, %s153_s17, %s154_s18  }
   0x6   :  { %s28_s20 = sshll.u32 %s155_s19, 4  ;;  %s29_s20 = int_to_ptr.vmem [resolvable:$true] %s28_s20 }
   0x7   :  { %34 = dma.hbm_to_vmem [thread:$0]  %s27_s16, 256, %s29_s20, [#allocation5], %s153_s17, %s153_s17, %s154_s18  }
   0x8   :  { %148 = dma.done.wait [#allocation3], 256  }
   0x9   :  { %149 = vsyncadd [#allocation3], 4294967040 }
   0xa   :  { %150 = dma.done.wait [#allocation5], 256  }
   0xb   :  { %151 = vsyncadd [#allocation5], 4294967040  ;;  %v43_v0 = vld [vmem:[#allocation2] sm:$0xff]  ;;  %v44_v1 = vld [vmem:[#allocation2 + $0x8] sm:$0xff]  ;;  %vm79_vm0 = vcmask 7168  }
   0xc   :  { %47 = vmax.xlane.f32.xlu0 %v43_v0  ;;  %v45_v2 = vld [vmem:[#allocation4] sm:$0xff]  ;;  %v46_v3 = vld [vmem:[#allocation4 + $0x8] sm:$0xff] }
   0xd   :  { %65 = vadd.xlane.f32.xlu2 %v45_v2 }
  0x14   :  { %49 = vmax.xlane.f32.xlu0 %v44_v1 }
  0x15   :  { %67 = vadd.xlane.f32.xlu2 %v46_v3 }
  0x7f   :  { %v48_v4 = vpop.xlane.xlu0 %47 }
  0x80   :  { %v51_v5 = vsub.f32 %v43_v0, %v48_v4  ;;  %v66_v15 = vpop.xlane.xlu2 %65 }
  0x82   :  { %v69_v6 = vmul.f32 %v51_v5, %v45_v2  ;;  %v53_v7 = vmul.f32 1.442695, %v51_v5 }
  0x84   :  { %71 = vadd.xlane.f32.xlu0 %v69_v6  ;;  %92 = vpow2.f32 %v53_v7 }
  0x87   :  { %v50_v8 = vpop.xlane.xlu0 %49 }
  0x88   :  { %v52_v9 = vsub.f32 %v44_v1, %v50_v8  ;;  %v68_v23 = vpop.xlane.xlu2 %67 }
  0x8a   :  { %v93_v10 = vpop.eup %92  ;;  %v55_v11 = vmul.f32 1.442695, %v52_v9  ;;  %v70_v13 = vmul.f32 %v52_v9, %v46_v3 }
  0x8b   :  { %57 = vadd.xlane.f32.xlu1 %v93_v10 }
  0x8c   :  { %94 = vpow2.f32 %v55_v11 }
  0x92   :  { %v95_v12 = vpop.eup %94 }
  0x93   :  { %59 = vadd.xlane.f32.xlu1 %v95_v12 }
  0x9b   :  { %73 = vadd.xlane.f32.xlu1 %v70_v13 }
  0xf7   :  { %v72_v20 = vpop.xlane.xlu0 %71 }
  0xfe   :  { %v58_v14 = vpop.xlane.xlu1 %57 }
  0xff   :  { %96 = vlog2.f32 %v58_v14 }
 0x105   :  { %v97_v16 = vpop.eup %96 }
 0x106   :  { %v62_v17 = vmul.f32 0.6931472, %v97_v16  ;;  %v60_v18 = vpop.xlane.xlu1 %59 }
 0x107   :  { %98 = vlog2.f32 %v60_v18 }
 0x108   :  { %v75_v19 = vmul.f32 %v66_v15, %v62_v17 }
 0x10a   :  { %v77_v21 = vsub.f32 %v75_v19, %v72_v20 }
 0x10c   :  { %80 = vst.msk [vmem:[%s185_s2] sm:$0xff] %vm79_vm0, %v77_v21 }
 0x10d   :  { %v99_v22 = vpop.eup %98 }
 0x10e   :  { %v64_v24 = vmul.f32 0.6931472, %v99_v22  ;;  %v74_v26 = vpop.xlane.xlu1 %73 }
 0x110   :  { %v76_v25 = vmul.f32 %v68_v23, %v64_v24 }
 0x112   :  { %v78_v27 = vsub.f32 %v76_v25, %v74_v26 }
 0x114   :  { %81 = vst.msk [vmem:[%s185_s2 + $0x8] sm:$0xff] %vm79_vm0, %v78_v27 }
 0x115   :  { %86 = vsyncpa [#allocation3], 1 }
 0x116   :  { %87 = vsyncpa [#allocation5], 1 }

</bundles_post_ra>
